<compile_context>
chip_gen: v7x
topology: tpu7x:2x2x1
jax: 0.10.0
libtpu: 0.0.40
codegen_flags: <defaults>
</compile_context>

<pallas_src>
import jax
import jax.numpy as jnp
import numpy as np
from jax.experimental import pallas as pl
from jax.experimental.pallas import tpu as pltpu


# ---------------------------------------------------------------------------
# Deterministic parameter init (mirrors Rotary._init_weight exactly).
# ---------------------------------------------------------------------------
def init_rotary_weight(n_pos: int, dim: int) -> jnp.ndarray:
    pos = np.arange(n_pos, dtype=np.float64)[:, None]                    # (n_pos, 1)
    j = np.arange(dim, dtype=np.float64)[None, :]                        # (1, dim)
    position_enc = pos / np.power(10000.0, 2.0 * (j // 2) / dim)         # (n_pos, dim)
    sentinel = dim // 2 if dim % 2 == 0 else dim // 2 + 1
    out = np.zeros((n_pos, dim), dtype=np.float32)
    out[:, 0:sentinel] = np.sin(position_enc[:, 0::2]).astype(np.float32)
    out[:, sentinel:] = np.cos(position_enc[:, 1::2]).astype(np.float32)
    return jnp.asarray(out, dtype=jnp.float32)


def _round_up(x: int, m: int) -> int:
    return ((x + m - 1) // m) * m


def _row_chunks(total_rows: int, num_chunks: int):
    """Split [0, total_rows) into <= num_chunks contiguous, 8-row-aligned chunks (last exact)."""
    per = _round_up(pl.cdiv(total_rows, num_chunks), 8)
    chunks, start = [], 0
    while start < total_rows:
        rows = min(per, total_rows - start)
        chunks.append((start, rows))
        start += rows
    return tuple(chunks)


# ---------------------------------------------------------------------------
# Pallas kernel: direct HBM->HBM row-slice copy via async DMA (no VMEM bounce,
# no grid).  All chunk starts/sizes are static Python ints baked into the body.
# ---------------------------------------------------------------------------
def _make_row_slice_kernel(chunks):
    def kernel(w_hbm, o_hbm, sems):
        copies = []
        for idx, (start, rows) in enumerate(chunks):          # start all DMAs first
            cp = pltpu.make_async_copy(
                w_hbm.at[pl.ds(start, rows), :],
                o_hbm.at[pl.ds(start, rows), :],
                sems.at[idx],
            )
            cp.start()
            copies.append(cp)
        for cp in copies:                                      # then wait on all
            cp.wait()
    return kernel


def rotary_forward(weight: jnp.ndarray, max_seq_len: int, *, num_dma_streams: int | None = None) -> jnp.ndarray:
    """Equivalent of Rotary.forward(max_seq_len): rows [0, max_seq_len) of the sinusoidal table."""
    n_pos, dim = weight.shape
    assert 0 < max_seq_len <= n_pos, "max_seq_len must not exceed num_positions"

    # Zero-copy fast path: the whole table is requested — no HBM round trip needed.
    if max_seq_len == n_pos:
        return weight

    total_bytes = max_seq_len * dim * weight.dtype.itemsize
    if num_dma_streams is None:
        # A single descriptor covers small/medium copies; a couple of concurrent
        # streams help keep HBM busy for very large slices.
        num_dma_streams = 1 if total_bytes <= (8 << 20) else 2
    num_dma_streams = max(1, min(int(num_dma_streams), pl.cdiv(max_seq_len, 8)))

    chunks = _row_chunks(max_seq_len, num_dma_streams)

    return pl.pallas_call(
        _make_row_slice_kernel(chunks),
        out_shape=jax.ShapeDtypeStruct((max_seq_len, dim), weight.dtype),
        in_specs=[pl.BlockSpec(memory_space=pl.ANY)],    # weight stays in HBM
        out_specs=pl.BlockSpec(memory_space=pl.ANY),     # output written in HBM by the DMA
        scratch_shapes=[pltpu.SemaphoreType.DMA((len(chunks),))],
    )(weight)


# ---------------------------------------------------------------------------
# Demo / correctness check
# ---------------------------------------------------------------------------
if __name__ == "__main__":
    # Small, deterministic configuration consistent with the module's __init__.
    num_positions = 512
    embedding_dim = 128   # lane-dense last axis (multiple of 128)
    max_seq_len = 384

    # PRNGKey only to satisfy "deterministic example inputs"; the module has no
    # random parameters (fixed sinusoidal buffer).
    _ = jax.random.PRNGKey(0)

    weight = init_rotary_weight(num_positions, embedding_dim)
    ref = np.asarray(weight)

    # Path 1: single direct HBM->HBM DMA.
    out = jax.block_until_ready(rotary_forward(weight, max_seq_len))
    np.testing.assert_allclose(np.asarray(out), ref[:max_seq_len], rtol=0, atol=0)
    assert out.shape == (max_seq_len, embedding_dim)
    assert out.dtype == jnp.float32

    # Path 2: multi-stream DMA path (two concurrent descriptors, exact last chunk).
    out2 = jax.block_until_ready(rotary_forward(weight, 200, num_dma_streams=2))
    np.testing.assert_allclose(np.asarray(out2), ref[:200], rtol=0, atol=0)

    # Path 3: zero-copy fast path (full table).
    out3 = jax.block_until_ready(rotary_forward(weight, num_positions))
    np.testing.assert_allclose(np.asarray(out3), ref, rtol=0, atol=0)

    # TODO(synk): adjust_attention / apply_rotary_position_embeddings are not part of
    # forward() and depend on an external multihead_atn_fn; best served by fusing the
    # sin/cos generation into the consumer attention kernel rather than materializing here.
    print("KERNEL_OK")
</pallas_src>

<mosaic_0001>
module attributes {stable_mosaic.version = 11 : i64} {
  func.func @kernel(%arg0: memref<512x128xf32, #tpu.memory_space<any>>, %arg1: memref<384x128xf32, #tpu.memory_space<any>>, %arg2: memref<1x!tpu.dma_semaphore, #tpu.memory_space<semaphore_mem>>) attributes {dimension_semantics = [], scalar_prefetch = 0 : i64, scratch_operands = 1 : i64, tpu.core_type = #tpu.core_type<tc>} {
    %c0_i32 = arith.constant 0 : i32
    %c0_i32_0 = arith.constant 0 : i32
    %c0_i32_1 = arith.constant 0 : i32
    %0 = tpu.memref_slice %arg0[%c0_i32_0, %c0_i32_1] : memref<512x128xf32, #tpu.memory_space<any>> -> memref<384x128xf32, #tpu.memory_space<any>>
    %c0_i32_2 = arith.constant 0 : i32
    %c0_i32_3 = arith.constant 0 : i32
    %1 = tpu.memref_slice %arg1[%c0_i32_2, %c0_i32_3] : memref<384x128xf32, #tpu.memory_space<any>> -> memref<384x128xf32, #tpu.memory_space<any>>
    %2 = tpu.memref_slice %arg2[%c0_i32] : memref<1x!tpu.dma_semaphore, #tpu.memory_space<semaphore_mem>> -> memref<1x!tpu.dma_semaphore, #tpu.memory_space<semaphore_mem>>
    %3 = tpu.memref_squeeze %2 : memref<1x!tpu.dma_semaphore, #tpu.memory_space<semaphore_mem>> -> memref<!tpu.dma_semaphore, #tpu.memory_space<semaphore_mem>>
    tpu.enqueue_dma source(%0 : memref<384x128xf32, #tpu.memory_space<any>>) target(%1 : memref<384x128xf32, #tpu.memory_space<any>>) target_semaphore(%3 : memref<!tpu.dma_semaphore, #tpu.memory_space<semaphore_mem>>)
    %c0_i32_4 = arith.constant 0 : i32
    %c0_i32_5 = arith.constant 0 : i32
    %c0_i32_6 = arith.constant 0 : i32
    %4 = tpu.memref_slice %arg0[%c0_i32_5, %c0_i32_6] : memref<512x128xf32, #tpu.memory_space<any>> -> memref<384x128xf32, #tpu.memory_space<any>>
    %c0_i32_7 = arith.constant 0 : i32
    %c0_i32_8 = arith.constant 0 : i32
    %5 = tpu.memref_slice %arg1[%c0_i32_7, %c0_i32_8] : memref<384x128xf32, #tpu.memory_space<any>> -> memref<384x128xf32, #tpu.memory_space<any>>
    %6 = tpu.memref_slice %arg2[%c0_i32_4] : memref<1x!tpu.dma_semaphore, #tpu.memory_space<semaphore_mem>> -> memref<1x!tpu.dma_semaphore, #tpu.memory_space<semaphore_mem>>
    %7 = tpu.memref_squeeze %6 : memref<1x!tpu.dma_semaphore, #tpu.memory_space<semaphore_mem>> -> memref<!tpu.dma_semaphore, #tpu.memory_space<semaphore_mem>>
    tpu.wait_dma2 semaphore(%7 : memref<!tpu.dma_semaphore, #tpu.memory_space<semaphore_mem>>) src(%4 : memref<384x128xf32, #tpu.memory_space<any>>) dst(%5 : memref<384x128xf32, #tpu.memory_space<any>>)
    return
  }
}

</mosaic_0001>

<bundles_post_ra>
// kernel: tpu_custom_call.1
= control target key start
LH: loop header
LB: loop body
LE: loop exit
PB: predicated region body
PF: predicated region fallthrough
CT: control target
= control target key end

     0   :  { %s34_s6 = smov [#allocation2]   ;;  %s35_s7 = smov [#allocation3]   ;;  %s53_s0 = inlined_call_operand.hbm [shape: f32[512,128], index: 0, kind: input, shape index: {}]   ;;  %s54_s1 = inlined_call_operand.hbm [shape: f32[384,128], index: 1, kind: output, shape index: {}]  }
   0x1   :  { %s36_s8 = smov 0  }
   0x2   :  { %18 = dma.general %s53_s0, 6144, %s54_s1, %s34_s6, %s35_s7, [#allocation4], %s36_s8, 0  }
   0x3   :  { %32 = dma.done.wait [#allocation2], 6144 }
   0x4   :  { %33 = vsyncadd [#allocation2], 4294961152 }
   0x5   :  { %22 = vsyncmov [#allocation2] }
   0x8   :  { %s23_s13 = vpop.sfrf %22 }
   0x9   :  { %p28_p0 = scmp.ne.s32.totalorder %s23_s13, 0 }
   0xb   :  { %27 = shalt.err (%p28_p0)  }

</bundles_post_ra>
